<compile_context>
chip_gen: v7x
topology: tpu7x:2x2x1
jax: 0.10.0
libtpu: 0.0.40
codegen_flags: <defaults>
</compile_context>

<pallas_src>
import jax
import jax.numpy as jnp
from jax.experimental import pallas as pl
from jax.experimental.pallas import tpu as pltpu


# -----------------------------------------------------------------------------
# Glue: Gaussian 1-D kernel and reflect-pad-folded horizontal mixing matrix
# (mirrors _get_gaussian_kernel1d / _get_gaussian_kernel2d separably).
# -----------------------------------------------------------------------------
def _gaussian_kernel1d(kernel_size: int, sigma) -> jnp.ndarray:
    ksize_half = (kernel_size - 1) * 0.5
    x = jnp.linspace(-ksize_half, ksize_half, num=kernel_size, dtype=jnp.float32)
    pdf = jnp.exp(-0.5 * (x / sigma) ** 2)
    return pdf / pdf.sum()


def _reflect_index(idx, size):
    # torch F.pad(mode='reflect') index mapping (no edge repeat).
    idx = jnp.where(idx < 0, -idx, idx)
    return jnp.where(idx >= size, 2 * (size - 1) - idx, idx)


def _reflect_static(i: int, size: int) -> int:
    # Static (Python int) version of the reflect index mapping.
    if i < 0:
        i = -i
    if i >= size:
        i = 2 * (size - 1) - i
    return i


def _horizontal_mix_matrix(width: int, k1d: jnp.ndarray) -> jnp.ndarray:
    """(W, W) matrix A with A[s, w] = sum_dx k[dx] * [s == reflect(w + dx - p)].

    (row @ A)[w] equals the 1-D reflect-padded Gaussian conv of `row` at w,
    i.e. the horizontal blur pass with the reflect padding folded in.
    """
    k = int(k1d.shape[0])
    p = k // 2
    pos = jnp.arange(width)
    a = jnp.zeros((width, width), jnp.float32)
    for dx in range(k):  # k is a static Python int
        src = _reflect_index(pos + dx - p, width)
        a = a + k1d[dx] * jax.nn.one_hot(src, width, dtype=jnp.float32).T
    return a


# -----------------------------------------------------------------------------
# Pallas kernel: separable blur over a channel-group block.
# -----------------------------------------------------------------------------
def _blur_kernel(kyw_ref, ax_ref, x_ref, o_ref):
    # kyw_ref: (ky,) f32 vertical taps in SMEM (scalar reads)
    # ax_ref : (W, W) bf16 horizontal mixing matrix (reflect pad folded in), VMEM
    # x_ref  : (cb, H, W) input channel-group block, VMEM
    # o_ref  : (cb, H, W) output block in the final storage dtype, VMEM
    cb, H, W = x_ref.shape
    ky = kyw_ref.shape[0]
    ph = ky // 2

    # ---- horizontal pass FIRST, on the MXU in bf16 (reflect pad folded into
    # ax); f32 accumulation.  (H % 8 == 0 makes the reshape layout-free.) ----
    lhs = x_ref[...].reshape(cb * H, W).astype(jnp.bfloat16)
    hblur = jnp.dot(lhs, ax_ref[...], preferred_element_type=jnp.float32)
    hblur = hblur.reshape(cb, H, W)

    # ---- vertical pass: ky f32 VPU taps read straight from the matmul
    # result.  Interior rows use same-shape sublane-shifted slices; only the
    # 2*ph boundary rows get dedicated reflected per-row combos.  No padded
    # copy, no scratch. ----
    n_top = min(ph, H)
    n_int = max(H - 2 * ph, 0)
    n_bot = H - n_top - n_int

    if n_int > 0:
        acc = kyw_ref[0] * hblur[:, 0:n_int, :]
        for dy in range(1, ky):
            acc = acc + kyw_ref[dy] * hblur[:, dy:dy + n_int, :]
        o_ref[:, ph:ph + n_int, :] = acc.astype(o_ref.dtype)

    def _edge_row(h):
        s0 = _reflect_static(h - ph, H)
        r = kyw_ref[0] * hblur[:, s0:s0 + 1, :]
        for dy in range(1, ky):
            s = _reflect_static(h + dy - ph, H)
            r = r + kyw_ref[dy] * hblur[:, s:s + 1, :]
        return r

    for h in range(n_top):
        o_ref[:, h:h + 1, :] = _edge_row(h).astype(o_ref.dtype)
    for h in range(H - n_bot, H):
        o_ref[:, h:h + 1, :] = _edge_row(h).astype(o_ref.dtype)


def _pick_channel_block(n: int, H: int, W: int, in_bytes: int, out_bytes: int,
                        budget_bytes: int) -> int:
    """Channel-group size: divides n, ~1-4 MiB working set, >=4 grid steps
    preferred (pipelining + >=2 steps per TensorCore on v7x)."""
    # Per-channel working set in one grid step: double-buffered input + output
    # blocks, f32 horizontal-blur intermediate, bf16 MXU operand copy.
    per_ch = H * W * (2 * in_bytes + 2 * out_bytes + 4 + 2)
    divs = [d for d in range(1, n + 1) if n % d == 0]
    # Prefer groups whose flattened row count is 8-aligned (free reshape for
    # the MXU operand).
    aligned = [d for d in divs if (d * H) % 8 == 0] or divs
    # ~1 MiB tiles already reach ~85% of HBM roofline; cap at ~4 MiB.
    cap = min(budget_bytes, 4 << 20)
    fitting = [d for d in aligned if d * per_ch <= cap]
    if not fitting:
        # TODO(synk): H-strip (halo) tiling for images where even one channel
        # exceeds the VMEM budget; fall back to the smallest group for now.
        fitting = [min(aligned)]
    for min_steps in (4, 2, 1):
        cands = [d for d in fitting if n // d >= min_steps]
        if cands:
            return max(cands)
    return min(fitting)


def gaussian_blur_pallas(img: jnp.ndarray, kernel_size, sigma) -> jnp.ndarray:
    """img: (B, C, H, W); kernel_size = (kx, ky); sigma = (sx, sy)."""
    B, C, H, W = img.shape
    kx, ky = int(kernel_size[0]), int(kernel_size[1])
    pw, ph = kx // 2, ky // 2
    if pw >= W or ph >= H:
        raise ValueError("reflect padding requires kernel_size // 2 < image dims")

    orig_dtype = img.dtype
    is_float = jnp.issubdtype(orig_dtype, jnp.floating)
    compute_in = orig_dtype if is_float else jnp.float32
    out_dtype = orig_dtype if is_float else jnp.float32
    x = img.astype(compute_in).reshape(B * C, H, W)

    kx_w = _gaussian_kernel1d(kx, sigma[0])
    ky_w = _gaussian_kernel1d(ky, sigma[1])
    # bf16 mixing matrix: native MXU input dtype, half the VMEM footprint.
    ax = _horizontal_mix_matrix(W, kx_w).astype(jnp.bfloat16)
    # TODO(synk): for very wide images (W >~ 512) replace the dense (W, W)
    # matmul with a banded / pltpu.roll horizontal pass (kx instead of W MACs
    # per pixel) so the MXU never becomes the saturated slot.

    N = B * C
    in_b = jnp.dtype(compute_in).itemsize
    out_b = jnp.dtype(out_dtype).itemsize

    # Generation-aware VMEM limit: ~64 MiB on v5e/v6e (128 MiB physical),
    # ~48 MiB on v7x (64 MiB physical).
    try:
        vmem_cap = int(pltpu.get_tpu_info().vmem_capacity_bytes)
    except Exception:
        vmem_cap = 64 << 20
    vmem_limit = min(vmem_cap * 3 // 4, 64 << 20)
    ax_bytes = 2 * W * W * 2  # double-buffered bf16 mixing matrix
    block_budget = max(1 << 20, vmem_limit // 3 - ax_bytes)

    cb = _pick_channel_block(N, H, W, in_b, out_b, block_budget)
    grid = (N // cb,)

    out = pl.pallas_call(
        _blur_kernel,
        out_shape=jax.ShapeDtypeStruct((N, H, W), out_dtype),
        grid=grid,
        in_specs=[
            pl.BlockSpec(memory_space=pltpu.MemorySpace.SMEM),   # vertical taps
            # Constant block index: the pipeline re-uses the fetched matrix,
            # no per-step re-DMA.
            pl.BlockSpec((W, W), lambda n: (0, 0)),
            pl.BlockSpec((cb, H, W), lambda n: (n, 0, 0)),       # input block
        ],
        out_specs=pl.BlockSpec((cb, H, W), lambda n: (n, 0, 0)),
        compiler_params=pltpu.CompilerParams(
            # TODO(synk): pltpu.CORE_PARALLEL on v7x (2 TCs/chip) once the
            # core-count can be queried reliably; plain "parallel" is safe on
            # all generations.
            dimension_semantics=("parallel",),
            vmem_limit_bytes=int(vmem_limit),
        ),
    )(ky_w, ax, x)

    out = out.reshape(B, C, H, W)
    if not is_float:
        # torchvision _cast_squeeze_out: round then cast back to integer dtype.
        # TODO(synk): fold round+clip+cast into the kernel store to save an
        # extra HBM pass for integer images.
        info = jnp.iinfo(orig_dtype)
        out = jnp.clip(jnp.round(out), info.min, info.max).astype(orig_dtype)
    return out


# -----------------------------------------------------------------------------
# Module wrapper mirroring GaussianBlur.forward
# -----------------------------------------------------------------------------
class GaussianBlurPallas:
    def __init__(self, kernel_size, sigma=(0.1, 2.0)):
        if isinstance(kernel_size, (int, float)):
            kernel_size = (int(kernel_size), int(kernel_size))
        self.kernel_size = tuple(kernel_size)
        for ks in self.kernel_size:
            if ks <= 0 or ks % 2 == 0:
                raise ValueError("Kernel size must be odd and positive.")
        if isinstance(sigma, (int, float)):
            sigma = (float(sigma), float(sigma))
        if not (0.0 < sigma[0] <= sigma[1]):
            raise ValueError("sigma values should be positive and of the form (min, max).")
        self.sigma = sigma

    def forward(self, img, key):
        # sigma ~ Uniform(sigma_min, sigma_max), sampled deterministically from
        # `key` (replaces torch.empty(1).uniform_ in GaussianBlur.get_params).
        s = jax.random.uniform(
            key, (), jnp.float32, minval=self.sigma[0], maxval=self.sigma[1]
        )
        return gaussian_blur_pallas(img, self.kernel_size, (s, s))

    __call__ = forward


# -----------------------------------------------------------------------------
def _reference_blur(img, kernel_size, sigma):
    """Pure-JAX f32 reference (2-D taps on a reflect-padded copy)."""
    B, C, H, W = img.shape
    kx, ky = kernel_size
    pw, ph = kx // 2, ky // 2
    k1x = _gaussian_kernel1d(kx, sigma[0])
    k1y = _gaussian_kernel1d(ky, sigma[1])
    k2d = (k1y[:, None] * k1x[None, :]).astype(jnp.float32)
    xp = jnp.pad(img, ((0, 0), (0, 0), (ph, ph), (pw, pw)), mode="reflect")
    acc = jnp.zeros_like(img)
    for dy in range(ky):
        for dx in range(kx):
            acc = acc + k2d[dy, dx] * xp[:, :, dy:dy + H, dx:dx + W]
    return acc


if __name__ == "__main__":
    key = jax.random.PRNGKey(0)
    k_img, k_sigma = jax.random.split(key)

    B, C, H, W = 2, 4, 16, 16
    x = jax.random.uniform(k_img, (B, C, H, W), dtype=jnp.float32)

    blur = GaussianBlurPallas(kernel_size=5, sigma=(0.1, 2.0))
    out = jax.block_until_ready(blur.forward(x, k_sigma))

    # Correctness check against the pure-JAX f32 reference with the same sigma.
    s = jax.random.uniform(k_sigma, (), jnp.float32, minval=0.1, maxval=2.0)
    ref = _reference_blur(x, blur.kernel_size, (s, s))
    assert out.shape == (B, C, H, W)
    err = float(jnp.max(jnp.abs(out - ref)))
    # Tolerance accounts for the bf16 MXU operands in the horizontal pass
    # (worst case a few 1e-3 on O(1) pixel values); vertical pass is f32.
    assert err < 1e-2, err

    print("KERNEL_OK")
</pallas_src>

<mosaic_0001>
module attributes {stable_mosaic.version = 11 : i64} {
  func.func @_blur_kernel(%arg0: i32, %arg1: memref<5xf32, #tpu.memory_space<smem>>, %arg2: memref<16x16xbf16, #tpu.memory_space<vmem>>, %arg3: memref<2x16x16xf32, #tpu.memory_space<vmem>>, %arg4: memref<2x16x16xf32, #tpu.memory_space<vmem>>) attributes {dimension_semantics = [#tpu.dimension_semantics<parallel>], iteration_bounds = array<i64: 4>, scalar_prefetch = 0 : i64, scratch_operands = 0 : i64, tpu.core_type = #tpu.core_type<tc>, window_params = [{transform_indices = @transform_0, window_bounds = array<i64: 5>}, {pipeline_mode = #tpu.pipeline_mode<synchronous>, transform_indices = @transform_1, window_bounds = array<i64: 16, 16>}, {transform_indices = @transform_2, window_bounds = array<i64: 2, 16, 16>}, {transform_indices = @transform_3, window_bounds = array<i64: 2, 16, 16>}]} {
    %c0 = arith.constant 0 : index
    %c0_0 = arith.constant 0 : index
    %c0_1 = arith.constant 0 : index
    %0 = vector.load %arg3[%c0, %c0_0, %c0_1] : memref<2x16x16xf32, #tpu.memory_space<vmem>>, vector<2x16x16xf32>
    %1 = vector.shape_cast %0 : vector<2x16x16xf32> to vector<32x16xf32>
    %2 = arith.truncf %1 : vector<32x16xf32> to vector<32x16xbf16>
    %c0_2 = arith.constant 0 : index
    %c0_3 = arith.constant 0 : index
    %3 = vector.load %arg2[%c0_2, %c0_3] : memref<16x16xbf16, #tpu.memory_space<vmem>>, vector<16x16xbf16>
    %cst = arith.constant dense<0.000000e+00> : vector<32x16xf32>
    %4 = tpu.matmul %2, %3, %cst {dimension_numbers = #tpu.dot_dimension_numbers<[1], [0], [0], [1], [0, 0, 1, 1], [], []>} : vector<32x16xbf16>, vector<16x16xbf16>, vector<32x16xf32> -> vector<32x16xf32>
    %5 = vector.shape_cast %4 : vector<32x16xf32> to vector<2x16x16xf32>
    %c0_4 = arith.constant 0 : index
    %6 = memref.load %arg1[%c0_4] : memref<5xf32, #tpu.memory_space<smem>>
    %7 = vector.extract_strided_slice %5 {offsets = [0, 0, 0], sizes = [2, 12, 16], strides = [1, 1, 1]} : vector<2x16x16xf32> to vector<2x12x16xf32>
    %8 = vector.broadcast %6 : f32 to vector<2x12x16xf32>
    %9 = arith.mulf %8, %7 : vector<2x12x16xf32>
    %c1 = arith.constant 1 : index
    %10 = memref.load %arg1[%c1] : memref<5xf32, #tpu.memory_space<smem>>
    %11 = vector.extract_strided_slice %5 {offsets = [0, 1, 0], sizes = [2, 12, 16], strides = [1, 1, 1]} : vector<2x16x16xf32> to vector<2x12x16xf32>
    %12 = vector.broadcast %10 : f32 to vector<2x12x16xf32>
    %13 = arith.mulf %12, %11 : vector<2x12x16xf32>
    %14 = arith.addf %9, %13 : vector<2x12x16xf32>
    %c2 = arith.constant 2 : index
    %15 = memref.load %arg1[%c2] : memref<5xf32, #tpu.memory_space<smem>>
    %16 = vector.extract_strided_slice %5 {offsets = [0, 2, 0], sizes = [2, 12, 16], strides = [1, 1, 1]} : vector<2x16x16xf32> to vector<2x12x16xf32>
    %17 = vector.broadcast %15 : f32 to vector<2x12x16xf32>
    %18 = arith.mulf %17, %16 : vector<2x12x16xf32>
    %19 = arith.addf %14, %18 : vector<2x12x16xf32>
    %c3 = arith.constant 3 : index
    %20 = memref.load %arg1[%c3] : memref<5xf32, #tpu.memory_space<smem>>
    %21 = vector.extract_strided_slice %5 {offsets = [0, 3, 0], sizes = [2, 12, 16], strides = [1, 1, 1]} : vector<2x16x16xf32> to vector<2x12x16xf32>
    %22 = vector.broadcast %20 : f32 to vector<2x12x16xf32>
    %23 = arith.mulf %22, %21 : vector<2x12x16xf32>
    %24 = arith.addf %19, %23 : vector<2x12x16xf32>
    %c4 = arith.constant 4 : index
    %25 = memref.load %arg1[%c4] : memref<5xf32, #tpu.memory_space<smem>>
    %26 = vector.extract_strided_slice %5 {offsets = [0, 4, 0], sizes = [2, 12, 16], strides = [1, 1, 1]} : vector<2x16x16xf32> to vector<2x12x16xf32>
    %27 = vector.broadcast %25 : f32 to vector<2x12x16xf32>
    %28 = arith.mulf %27, %26 : vector<2x12x16xf32>
    %29 = arith.addf %24, %28 : vector<2x12x16xf32>
    %c0_5 = arith.constant 0 : index
    %c2_6 = arith.constant 2 : index
    %c0_7 = arith.constant 0 : index
    %30 = vector.load %arg4[%c0_5, %c2_6, %c0_7] : memref<2x16x16xf32, #tpu.memory_space<vmem>>, vector<2x12x16xf32>
    tpu.vector_store %arg4[%c0_5, %c2_6, %c0_7], %29 {strides = array<i32>} : memref<2x16x16xf32, #tpu.memory_space<vmem>>, vector<2x12x16xf32>,
    %c0_8 = arith.constant 0 : index
    %31 = memref.load %arg1[%c0_8] : memref<5xf32, #tpu.memory_space<smem>>
    %32 = vector.extract_strided_slice %5 {offsets = [0, 2, 0], sizes = [2, 1, 16], strides = [1, 1, 1]} : vector<2x16x16xf32> to vector<2x1x16xf32>
    %33 = vector.broadcast %31 : f32 to vector<2x1x16xf32>
    %34 = arith.mulf %33, %32 : vector<2x1x16xf32>
    %c1_9 = arith.constant 1 : index
    %35 = memref.load %arg1[%c1_9] : memref<5xf32, #tpu.memory_space<smem>>
    %36 = vector.extract_strided_slice %5 {offsets = [0, 1, 0], sizes = [2, 1, 16], strides = [1, 1, 1]} : vector<2x16x16xf32> to vector<2x1x16xf32>
    %37 = vector.broadcast %35 : f32 to vector<2x1x16xf32>
    %38 = arith.mulf %37, %36 : vector<2x1x16xf32>
    %39 = arith.addf %34, %38 : vector<2x1x16xf32>
    %c2_10 = arith.constant 2 : index
    %40 = memref.load %arg1[%c2_10] : memref<5xf32, #tpu.memory_space<smem>>
    %41 = vector.extract_strided_slice %5 {offsets = [0, 0, 0], sizes = [2, 1, 16], strides = [1, 1, 1]} : vector<2x16x16xf32> to vector<2x1x16xf32>
    %42 = vector.broadcast %40 : f32 to vector<2x1x16xf32>
    %43 = arith.mulf %42, %41 : vector<2x1x16xf32>
    %44 = arith.addf %39, %43 : vector<2x1x16xf32>
    %c3_11 = arith.constant 3 : index
    %45 = memref.load %arg1[%c3_11] : memref<5xf32, #tpu.memory_space<smem>>
    %46 = vector.extract_strided_slice %5 {offsets = [0, 1, 0], sizes = [2, 1, 16], strides = [1, 1, 1]} : vector<2x16x16xf32> to vector<2x1x16xf32>
    %47 = vector.broadcast %45 : f32 to vector<2x1x16xf32>
    %48 = arith.mulf %47, %46 : vector<2x1x16xf32>
    %49 = arith.addf %44, %48 : vector<2x1x16xf32>
    %c4_12 = arith.constant 4 : index
    %50 = memref.load %arg1[%c4_12] : memref<5xf32, #tpu.memory_space<smem>>
    %51 = vector.extract_strided_slice %5 {offsets = [0, 2, 0], sizes = [2, 1, 16], strides = [1, 1, 1]} : vector<2x16x16xf32> to vector<2x1x16xf32>
    %52 = vector.broadcast %50 : f32 to vector<2x1x16xf32>
    %53 = arith.mulf %52, %51 : vector<2x1x16xf32>
    %54 = arith.addf %49, %53 : vector<2x1x16xf32>
    %c0_13 = arith.constant 0 : index
    %c0_14 = arith.constant 0 : index
    %c0_15 = arith.constant 0 : index
    %55 = vector.load %arg4[%c0_13, %c0_14, %c0_15] : memref<2x16x16xf32, #tpu.memory_space<vmem>>, vector<2x1x16xf32>
    tpu.vector_store %arg4[%c0_13, %c0_14, %c0_15], %54 {strides = array<i32>} : memref<2x16x16xf32, #tpu.memory_space<vmem>>, vector<2x1x16xf32>,
    %c0_16 = arith.constant 0 : index
    %56 = memref.load %arg1[%c0_16] : memref<5xf32, #tpu.memory_space<smem>>
    %57 = vector.extract_strided_slice %5 {offsets = [0, 1, 0], sizes = [2, 1, 16], strides = [1, 1, 1]} : vector<2x16x16xf32> to vector<2x1x16xf32>
    %58 = vector.broadcast %56 : f32 to vector<2x1x16xf32>
    %59 = arith.mulf %58, %57 : vector<2x1x16xf32>
    %c1_17 = arith.constant 1 : index
    %60 = memref.load %arg1[%c1_17] : memref<5xf32, #tpu.memory_space<smem>>
    %61 = vector.extract_strided_slice %5 {offsets = [0, 0, 0], sizes = [2, 1, 16], strides = [1, 1, 1]} : vector<2x16x16xf32> to vector<2x1x16xf32>
    %62 = vector.broadcast %60 : f32 to vector<2x1x16xf32>
    %63 = arith.mulf %62, %61 : vector<2x1x16xf32>
    %64 = arith.addf %59, %63 : vector<2x1x16xf32>
    %c2_18 = arith.constant 2 : index
    %65 = memref.load %arg1[%c2_18] : memref<5xf32, #tpu.memory_space<smem>>
    %66 = vector.extract_strided_slice %5 {offsets = [0, 1, 0], sizes = [2, 1, 16], strides = [1, 1, 1]} : vector<2x16x16xf32> to vector<2x1x16xf32>
    %67 = vector.broadcast %65 : f32 to vector<2x1x16xf32>
    %68 = arith.mulf %67, %66 : vector<2x1x16xf32>
    %69 = arith.addf %64, %68 : vector<2x1x16xf32>
    %c3_19 = arith.constant 3 : index
    %70 = memref.load %arg1[%c3_19] : memref<5xf32, #tpu.memory_space<smem>>
    %71 = vector.extract_strided_slice %5 {offsets = [0, 2, 0], sizes = [2, 1, 16], strides = [1, 1, 1]} : vector<2x16x16xf32> to vector<2x1x16xf32>
    %72 = vector.broadcast %70 : f32 to vector<2x1x16xf32>
    %73 = arith.mulf %72, %71 : vector<2x1x16xf32>
    %74 = arith.addf %69, %73 : vector<2x1x16xf32>
    %c4_20 = arith.constant 4 : index
    %75 = memref.load %arg1[%c4_20] : memref<5xf32, #tpu.memory_space<smem>>
    %76 = vector.extract_strided_slice %5 {offsets = [0, 3, 0], sizes = [2, 1, 16], strides = [1, 1, 1]} : vector<2x16x16xf32> to vector<2x1x16xf32>
    %77 = vector.broadcast %75 : f32 to vector<2x1x16xf32>
    %78 = arith.mulf %77, %76 : vector<2x1x16xf32>
    %79 = arith.addf %74, %78 : vector<2x1x16xf32>
    %c0_21 = arith.constant 0 : index
    %c1_22 = arith.constant 1 : index
    %c0_23 = arith.constant 0 : index
    %80 = vector.load %arg4[%c0_21, %c1_22, %c0_23] : memref<2x16x16xf32, #tpu.memory_space<vmem>>, vector<2x1x16xf32>
    tpu.vector_store %arg4[%c0_21, %c1_22, %c0_23], %79 {strides = array<i32>} : memref<2x16x16xf32, #tpu.memory_space<vmem>>, vector<2x1x16xf32>,
    %c0_24 = arith.constant 0 : index
    %81 = memref.load %arg1[%c0_24] : memref<5xf32, #tpu.memory_space<smem>>
    %82 = vector.extract_strided_slice %5 {offsets = [0, 12, 0], sizes = [2, 1, 16], strides = [1, 1, 1]} : vector<2x16x16xf32> to vector<2x1x16xf32>
    %83 = vector.broadcast %81 : f32 to vector<2x1x16xf32>
    %84 = arith.mulf %83, %82 : vector<2x1x16xf32>
    %c1_25 = arith.constant 1 : index
    %85 = memref.load %arg1[%c1_25] : memref<5xf32, #tpu.memory_space<smem>>
    %86 = vector.extract_strided_slice %5 {offsets = [0, 13, 0], sizes = [2, 1, 16], strides = [1, 1, 1]} : vector<2x16x16xf32> to vector<2x1x16xf32>
    %87 = vector.broadcast %85 : f32 to vector<2x1x16xf32>
    %88 = arith.mulf %87, %86 : vector<2x1x16xf32>
    %89 = arith.addf %84, %88 : vector<2x1x16xf32>
    %c2_26 = arith.constant 2 : index
    %90 = memref.load %arg1[%c2_26] : memref<5xf32, #tpu.memory_space<smem>>
    %91 = vector.extract_strided_slice %5 {offsets = [0, 14, 0], sizes = [2, 1, 16], strides = [1, 1, 1]} : vector<2x16x16xf32> to vector<2x1x16xf32>
    %92 = vector.broadcast %90 : f32 to vector<2x1x16xf32>
    %93 = arith.mulf %92, %91 : vector<2x1x16xf32>
    %94 = arith.addf %89, %93 : vector<2x1x16xf32>
    %c3_27 = arith.constant 3 : index
    %95 = memref.load %arg1[%c3_27] : memref<5xf32, #tpu.memory_space<smem>>
    %96 = vector.extract_strided_slice %5 {offsets = [0, 15, 0], sizes = [2, 1, 16], strides = [1, 1, 1]} : vector<2x16x16xf32> to vector<2x1x16xf32>
    %97 = vector.broadcast %95 : f32 to vector<2x1x16xf32>
    %98 = arith.mulf %97, %96 : vector<2x1x16xf32>
    %99 = arith.addf %94, %98 : vector<2x1x16xf32>
    %c4_28 = arith.constant 4 : index
    %100 = memref.load %arg1[%c4_28] : memref<5xf32, #tpu.memory_space<smem>>
    %101 = vector.extract_strided_slice %5 {offsets = [0, 14, 0], sizes = [2, 1, 16], strides = [1, 1, 1]} : vector<2x16x16xf32> to vector<2x1x16xf32>
    %102 = vector.broadcast %100 : f32 to vector<2x1x16xf32>
    %103 = arith.mulf %102, %101 : vector<2x1x16xf32>
    %104 = arith.addf %99, %103 : vector<2x1x16xf32>
    %c0_29 = arith.constant 0 : index
    %c14 = arith.constant 14 : index
    %c0_30 = arith.constant 0 : index
    %105 = vector.load %arg4[%c0_29, %c14, %c0_30] : memref<2x16x16xf32, #tpu.memory_space<vmem>>, vector<2x1x16xf32>
    tpu.vector_store %arg4[%c0_29, %c14, %c0_30], %104 {strides = array<i32>} : memref<2x16x16xf32, #tpu.memory_space<vmem>>, vector<2x1x16xf32>,
    %c0_31 = arith.constant 0 : index
    %106 = memref.load %arg1[%c0_31] : memref<5xf32, #tpu.memory_space<smem>>
    %107 = vector.extract_strided_slice %5 {offsets = [0, 13, 0], sizes = [2, 1, 16], strides = [1, 1, 1]} : vector<2x16x16xf32> to vector<2x1x16xf32>
    %108 = vector.broadcast %106 : f32 to vector<2x1x16xf32>
    %109 = arith.mulf %108, %107 : vector<2x1x16xf32>
    %c1_32 = arith.constant 1 : index
    %110 = memref.load %arg1[%c1_32] : memref<5xf32, #tpu.memory_space<smem>>
    %111 = vector.extract_strided_slice %5 {offsets = [0, 14, 0], sizes = [2, 1, 16], strides = [1, 1, 1]} : vector<2x16x16xf32> to vector<2x1x16xf32>
    %112 = vector.broadcast %110 : f32 to vector<2x1x16xf32>
    %113 = arith.mulf %112, %111 : vector<2x1x16xf32>
    %114 = arith.addf %109, %113 : vector<2x1x16xf32>
    %c2_33 = arith.constant 2 : index
    %115 = memref.load %arg1[%c2_33] : memref<5xf32, #tpu.memory_space<smem>>
    %116 = vector.extract_strided_slice %5 {offsets = [0, 15, 0], sizes = [2, 1, 16], strides = [1, 1, 1]} : vector<2x16x16xf32> to vector<2x1x16xf32>
    %117 = vector.broadcast %115 : f32 to vector<2x1x16xf32>
    %118 = arith.mulf %117, %116 : vector<2x1x16xf32>
    %119 = arith.addf %114, %118 : vector<2x1x16xf32>
    %c3_34 = arith.constant 3 : index
    %120 = memref.load %arg1[%c3_34] : memref<5xf32, #tpu.memory_space<smem>>
    %121 = vector.extract_strided_slice %5 {offsets = [0, 14, 0], sizes = [2, 1, 16], strides = [1, 1, 1]} : vector<2x16x16xf32> to vector<2x1x16xf32>
    %122 = vector.broadcast %120 : f32 to vector<2x1x16xf32>
    %123 = arith.mulf %122, %121 : vector<2x1x16xf32>
    %124 = arith.addf %119, %123 : vector<2x1x16xf32>
    %c4_35 = arith.constant 4 : index
    %125 = memref.load %arg1[%c4_35] : memref<5xf32, #tpu.memory_space<smem>>
    %126 = vector.extract_strided_slice %5 {offsets = [0, 13, 0], sizes = [2, 1, 16], strides = [1, 1, 1]} : vector<2x16x16xf32> to vector<2x1x16xf32>
    %127 = vector.broadcast %125 : f32 to vector<2x1x16xf32>
    %128 = arith.mulf %127, %126 : vector<2x1x16xf32>
    %129 = arith.addf %124, %128 : vector<2x1x16xf32>
    %c0_36 = arith.constant 0 : index
    %c15 = arith.constant 15 : index
    %c0_37 = arith.constant 0 : index
    %130 = vector.load %arg4[%c0_36, %c15, %c0_37] : memref<2x16x16xf32, #tpu.memory_space<vmem>>, vector<2x1x16xf32>
    tpu.vector_store %arg4[%c0_36, %c15, %c0_37], %129 {strides = array<i32>} : memref<2x16x16xf32, #tpu.memory_space<vmem>>, vector<2x1x16xf32>,
    return
  }
  func.func @transform_0(%arg0: i32) -> i32 {
    %c0_i32 = arith.constant 0 : i32
    %c0_i32_0 = arith.constant 0 : i32
    return %c0_i32 : i32
  }
  func.func @transform_1(%arg0: i32) -> (i32, i32) {
    %c0_i32 = arith.constant 0 : i32
    %c0_i32_0 = arith.constant 0 : i32
    %c0_i32_1 = arith.constant 0 : i32
    return %c0_i32, %c0_i32_0 : i32, i32
  }
  func.func @transform_2(%arg0: i32) -> (i32, i32, i32) {
    %c0_i32 = arith.constant 0 : i32
    %c0_i32_0 = arith.constant 0 : i32
    %c0_i32_1 = arith.constant 0 : i32
    return %arg0, %c0_i32, %c0_i32_0 : i32, i32, i32
  }
  func.func @transform_3(%arg0: i32) -> (i32, i32, i32) {
    %c0_i32 = arith.constant 0 : i32
    %c0_i32_0 = arith.constant 0 : i32
    %c0_i32_1 = arith.constant 0 : i32
    return %arg0, %c0_i32, %c0_i32_0 : i32, i32, i32
  }
}

</mosaic_0001>

<bundles_post_ra>
// kernel: tpu_custom_call.1
= control target key start
LH: loop header
LB: loop body
LE: loop exit
PB: predicated region body
PF: predicated region fallthrough
CT: control target
= control target key end

     0   :  { %8 = vsyncpa [#allocation5], 0  ;;  %s1322_s0 = inlined_call_operand.hbm [shape: f32[5], index: 0, kind: input, shape index: {}]   ;;  %s1323_s1 = inlined_call_operand.hbm [shape: bf16[16,16], index: 1, kind: input, shape index: {}]   ;;  %s1324_s2 = inlined_call_operand.hbm [shape: f32[8,16,16], index: 2, kind: input, shape index: {}]   ;;  %s1325_s3 = inlined_call_operand.hbm [shape: f32[8,16,16], index: 3, kind: output, shape index: {}]  }
   0x1   :  { %9 = vsyncpa [#allocation3], 0 }
   0x2   :  { %10 = vsyncpa [#allocation8], 0 }
   0x3   :  { %12 = vsyncpa [#allocation8 + $0x1], 0 }
   0x4   :  { %13 = vsyncpa [#allocation4], 0 }
   0x5   :  { %15 = vsyncpa [#allocation4 + $0x1], 0  ;;  %s1022_s12 = smov 0   ;;  %s1024_s13 = smov 0  }
   0x6   :  { %s1026_s14 = smov 0   ;;  %s1028_s15 = smov 0  }
   0x7 LB: > { %s1043_s16 = sadd.s32 4294967295, %s990_s15   ;;  %s715_s17 = sadd.s32 4294967294, %s990_s15   ;;  %s990_s15 = sphi %s1028_s15, %s1349_s15   ;;  %s986_s14 = sphi %s1026_s14, %s1348_s14   ;;  %s982_s13 = sphi %s1024_s13, %s1347_s13   ;;  %s978_s12 = sphi %s1022_s12, %s1346_s12  }
   0x8   : > { %s1047_s18 = sadd.s32 1, %s990_s15   ;;  %s70_s19 = sadd.s32 1, %s986_s14 }
   0x9   : > { %s67_s20 = ssub.s32 %s990_s15, %s1047_s18  ;;  %p77_p0 = scmp.ne.s32.totalorder %s986_s14, %s982_s13 }
   0xa   : > { %p68_p1 = scmp.eq.s32.totalorder %s67_s20, 0  ;;  %p78_p2 = scmp.eq.s32.totalorder %s990_s15, 0 }
   0xb   : > { %p83_p3 = scmp.ne.s32.totalorder %s982_s13, %s978_s12  ;;  %p1327_p4 = scmp.eq.s32.totalorder %s1043_s16, 0 }
   0xc   : > { %s1059_s21 = scalar_select %p68_p1, %s986_s14, %s70_s19  }
   0xd   : > { %p79_p5 = por %p78_p2, %p77_p0  ;;  %p1063_p6 = por %p1327_p4, %p83_p3 }
   0xe   : > { %p107_p7 = scmp.eq.s32.totalorder %s1043_s16, 3  ;;  %p113_p8 = scmp.eq.s32.totalorder %s715_s17, 3 }
   0xf   : > { %s1331_s22 = scalar_select %p1063_p6, 1, 0 }
  0x10   : > { %p716_p9 = scmp.ge.s32.totalorder %s990_s15, 1  ;;  %p120_p10 = scmp.lt.s32.totalorder %s990_s15, 5 }
  0x11   : > { %p1070_p11 = por %p107_p7, %p77_p0  ;;  %p1074_p12 = por %p113_p8, %p83_p3 }
  0x12   : > { %p1078_p13 = pnand %p716_p9, %p120_p10  ;;  %p800_p2 = scmp.lt.s32.totalorder %s990_s15, 4 }
  0x13   : > { %s1332_s23 = scalar_select %p1070_p11, 1, 0 }
  0x14   : > { %s1333_s24 = scalar_select %p1074_p12, 1, 0 }
  0x15   : > { %s1334_s25 = scalar_select %p1078_p13, 1, 0 }
  0x16   : > { %p783_p1 = pneg %p1078_p13  ;;  %p1091_p0 = pnand %p800_p2, %p79_p5 }
  0x17   : > { %s992_s28 = smov [#allocation6]   ;;  %s845_s5 = scalar_lea.hbm %s1322_s0, 16 }
  0x18   : > { %p1087_p6 = pnand %p783_p1, %p1327_p4  ;;  %s141_s29 = sshll.u32 %s992_s28, 4  ;;  %s142_s29 = int_to_ptr.vmem [resolvable:$true] %s141_s29 }
  0x19   : > { %s1336_s27 = scalar_select %p1091_p0, 1, 0 }
  0x1a   : > { %p846_p3 = scmp.ne.s32.totalorder %s1322_s0, %s845_s5  ;;  %p847_p7 = pneg %p1087_p6 }
  0x1b   : > { %p852_p5 = scmp.lt.u32.totalorder %s845_s5, %s1322_s0 }
  0x1c   : > { %p848_p8 = pnand %p847_p7, %p846_p3 }
  0x1e   : > { %p849_p9 = pneg %p848_p8 }
  0x20   : > { %p854_p10 = pnand %p852_p5, %p849_p9 }
  0x22   : > { %857 = shalt.err (!%p854_p10)
}
  0x23   : > { %s993_s10 = smov [#allocation2]   ;;  %s155_s19 = sand.u32 1, %s986_s14  }
  0x24   : > { %786 = dma.hbm_to_smem (!%p1087_p6), %s1322_s0, 16, %s993_s10, [#allocation5]  }
  0x25   : > { %s858_s30 = scalar_lea.hbm %s1323_s1, 128 }
  0x26   : > { %p859_p1 = scmp.ne.s32.totalorder %s1323_s1, %s858_s30  ;;  %p865_p8 = scmp.lt.u32.totalorder %s858_s30, %s1323_s1 }
  0x28   : > { %p861_p2 = pnand %p859_p1, %p847_p7 }
  0x2a   : > { %p862_p3 = pneg %p861_p2 }
  0x2c   : > { %p867_p9 = pnand %p865_p8, %p862_p3 }
  0x2e   : > { %870 = shalt.err (!%p867_p9)
}
  0x2f   : > { %s871_s8 = scalar_lea.vmem %s142_s29, 128  ;;  %p879_p12 = scmp.lt.s32.totalorder %s142_s29, %s142_s29 }
  0x30   : > { %p872_p5 = scmp.ne.s32.totalorder %s142_s29, %s871_s8  ;;  %p880_p11 = scmp.lt.s32.totalorder %s871_s8, %s871_s8 }
  0x32   : > { %p874_p10 = pnand %p872_p5, %p847_p7  ;;  %p881_p13 = por %p880_p11, %p879_p12 }
  0x34   : > { %p875_p4 = pneg %p874_p10 }
  0x36   : > { %p882_p0 = pnand %p881_p13, %p875_p4 }
  0x38   : > { %885 = shalt.err (!%p882_p0)
}
  0x39   : > { %s994_s9 = smov 64   ;;  %s995_s10 = smov 4  }
  0x3a   : > { %789 = dma.hbm_to_vmem [thread:$0]  (!%p1087_p6), %s1323_s1, 128, %s142_s29, [#allocation3], %s994_s9, %s994_s9, %s995_s10  }
  0x3b   : > { %s720_s20 = sshll.u32 %s155_s19, 5  ;;  %s759_s28 = sshll.u32 %s990_s15, 9 }
  0x3c   : > { %s1139_s6 = scalar_lea.hbm %s1324_s2, %s759_s28  ;;  %s159_s5 = scalar_lea.vmem [#allocation7], %s720_s20 }
  0x3d   : > { %s167_s7 = sshll.u32 %s159_s5, 4  ;;  %s1143_s26 = scalar_lea.sflag [#allocation8], %s155_s19  ;;  %s1141_s7 = int_to_ptr.vmem [resolvable:$true] %s167_s7 }
  0x3e   : > { %s886_s8 = scalar_lea.hbm %s1139_s6, 512  ;;  %p1337_p6 = scmp.ne.s32.totalorder %s1336_s27, 0 }
  0x3f   : > { %p887_p4 = scmp.ne.s32.totalorder %s1139_s6, %s886_s8  ;;  %s891_s10 = scalar_lea.hbm %s1324_s2, 2048 }
  0x40   : > { %p888_p11 = pneg %p1337_p6  ;;  %p892_p0 = scmp.lt.u32.totalorder %s1139_s6, %s1324_s2 }
  0x41   : > { %p893_p7 = scmp.lt.u32.totalorder %s891_s10, %s886_s8  ;;  %p895_p2 = scmp.lt.u32.totalorder %s886_s8, %s1139_s6 }
  0x42   : > { %p889_p12 = pnand %p888_p11, %p887_p4 }
  0x43   : > { %p894_p1 = por %p893_p7, %p892_p0 }
  0x44   : > { %p890_p13 = pneg %p889_p12 }
  0x45   : > { %p896_p3 = por %p895_p2, %p894_p1 }
  0x47   : > { %p897_p8 = pnand %p896_p3, %p890_p13 }
  0x49   : > { %900 = shalt.err (!%p897_p8)
}
  0x4a   : > { %s901_s19 = scalar_lea.vmem %s1141_s7, 512  ;;  %s996_s20 = smov [#allocation7]  }
  0x4b   : > { %p902_p9 = scmp.ne.s32.totalorder %s1141_s7, %s901_s19  ;;  %s906_s28 = sshll.u32 %s996_s20, 4  ;;  %s907_s28 = int_to_ptr.vmem [resolvable:$false] %s906_s28 }
  0x4c   : > { %s908_s30 = scalar_lea.vmem %s907_s28, 1024  ;;  %p909_p4 = scmp.lt.s32.totalorder %s1141_s7, %s907_s28 }
  0x4d   : > { %p904_p5 = pnand %p902_p9, %p888_p11  ;;  %p910_p12 = scmp.lt.s32.totalorder %s908_s30, %s901_s19 }
  0x4f   : > { %p905_p10 = pneg %p904_p5  ;;  %p911_p0 = por %p910_p12, %p909_p4 }
  0x51   : > { %p912_p7 = pnand %p911_p0, %p905_p10 }
  0x53   : > { %915 = shalt.err (!%p912_p7)
}
  0x54   : > { %s997_s4 = smov 128   ;;  %s998_s5 = smov 8  }
  0x55   : > { %793 = dma.hbm_to_vmem [thread:$0]  (!%p1337_p6), %s1139_s6, 512, %s1141_s7, %s1143_s26, %s997_s4, %s997_s4, %s998_s5  }
  0x56   : > { %p1338_p11 = scmp.ne.s32.totalorder %s1334_s25, 0 }
  0x57   : > { %p1339_p13 = scmp.eq.s32.totalorder (!%p1338_p11), %s1043_s16, 0 }
  0x58   : > { %179 = sbr.rel (%p1338_p11) target bundleno = 366 (0x16e), region = 32 }
  0x5f   : > { %961 = dma.done.wait (%p1339_p13), [#allocation5], 16   ;;  %p1340_p1 = pmov %p1339_p13 }
  0x61   : > { %963 = vsyncadd (%p1340_p1), [#allocation5], 4294967280  ;;  %p1341_p2 = pmov %p1340_p1 }
  0x62   : > { %p1342_p3 = pmov %p1340_p1 }
  0x63   : > { %965 = dma.done.wait (%p1341_p2), [#allocation3], 128  }
  0x64   : > { %967 = vsyncadd (%p1342_p3), [#allocation3], 4294967168  ;;  %s1182_s8 = sand.u32 1, %s982_s13   ;;  %p1343_p6 = scmp.ne.s32.totalorder %s1331_s22, 0 }
  0x65   : > { %s727_s25 = sshll.u32 %s1182_s8, 5  ;;  %s190_s27 = scalar_lea.sflag [#allocation8], %s1182_s8 }
  0x66   : > { %s193_s6 = scalar_lea.vmem [#allocation7], %s727_s25 }
  0x67   : > { %969 = dma.done.wait (%p1343_p6), %s190_s27, 512  }
  0x68   : > { %971 = vsyncadd (%p1343_p6), %s190_s27, 4294966784 }
  0x69   : > { %198 = sfence }
  0x6a   : > { %v844_v0 = vld [vmem:[#allocation6] sm:$0xff]   ;;  %v220_v1 = vld [vmem:[%s193_s6] sm:$0xff]  ;;  %v221_v2 = vld [vmem:[%s193_s6 + $0x8] sm:$0xff]  ;;  %vm234_vm0 = vcmask 130048   ;;  %s401_s7 = sld [smem:[#allocation2]]  ;;  %s736_s26 = sld [smem:[#allocation2 + $0x1]] }
  0x6b   : > { %v222_v3 = vld [vmem:[%s193_s6 + $0x10] sm:$0xff]  ;;  %765 = vmatprep.subr.bf16.mxu0 %v844_v0  ;;  %v224_v4 = vpack.c.bf16 %v221_v2, %v220_v1  ;;  %v223_v5 = vld [vmem:[%s193_s6 + $0x18] sm:$0xff]  ;;  %s737_s29 = sld [smem:[#allocation2 + $0x2]]  ;;  %s738_s22 = sld [smem:[#allocation2 + $0x3]]  ;;  %vm306_vm1 = vcmask 1046528   ;;  %vm447_vm2 = vcmask 124930  }
  0x6c   : > { %766 = vmatpush3.bf16.msra.mxu0 %v844_v0  ;;  %v225_v6 = vpack.c.bf16 %v223_v5, %v222_v3  ;;  %s739_s9 = sld [smem:[#allocation2 + $0x4]]  ;;  %vm496_vm3 = vcmask 123905   ;;  %vm331_vm4 = vcmask 1045504   ;;  %vm356_vm5 = vcmask 1044480   ;;  %s1234_s10 = scalar_lea.vmem [#allocation9], %s727_s25 }
  0x6d   : > { %767 = vmatprep.mubr.msk.bf16.mxu0 %vm234_vm0, %v224_v4  ;;  %vm381_vm6 = vcmask 1043456   ;;  %vm397_vm7 = vcmask 125952   ;;  %vm551_vm8 = vcmask 126980   ;;  %s761_s11 = sshll.u32 %s1043_s16, 9  ;;  %s618_s17 = sshll.u32 %s1234_s10, 4  ;;  %vm600_vm9 = vcmask 128005   ;;  %s1277_s17 = int_to_ptr.vmem [resolvable:$true] %s618_s17 }
  0x6e   : > { %s1275_s28 = scalar_lea.hbm %s1325_s3, %s761_s11  ;;  %s604_s16 = scalar_lea.sflag [#allocation4], %s1182_s8 }
  0x6f   : > { %768 = vmatmul.mubr.msk.bf16.vlgmr.msra.gmra.mrb[0].mxu0 %vm234_vm0, %v225_v6  ;;  %s916_s30 = scalar_lea.vmem %s1277_s17, 512  ;;  %p1344_p9 = scmp.ne.s32.totalorder %s1332_s23, 0 }
  0x70   : > { %v402_v7 = vstv %s401_s7  ;;  %v406_v8 = vstv %s736_s26  ;;  %p917_p8 = scmp.ne.s32.totalorder %s1277_s17, %s916_s30  ;;  %s999_s4 = smov [#allocation9]  }
  0x71   : > { %v1194_v9 = vstv %s737_s29  ;;  %v1196_v10 = vstv %s738_s22  ;;  %s920_s5 = sshll.u32 %s999_s4, 4  ;;  %s921_s5 = int_to_ptr.vmem [resolvable:$false] %s920_s5 }
  0x72   : > { %v1198_v11 = vstv %s739_s9  ;;  %p918_p5 = pnand %p917_p8, %p1344_p9  ;;  %s922_s25 = scalar_lea.vmem %s921_s5, 1024 }
  0x73   : > { %p923_p4 = scmp.lt.s32.totalorder %s1277_s17, %s921_s5  ;;  %p924_p12 = scmp.lt.s32.totalorder %s922_s25, %s916_s30 }
  0x74   : > { %p919_p10 = pneg %p918_p5 }
  0x75   : > { %p925_p0 = por %p924_p12, %p923_p4 }
  0x77   : > { %p926_p7 = pnand %p925_p0, %p919_p10 }
 0x142   : > { %v769_v12 = vpop.f32.mrb[0].mxu0 }
 0x143   : > { %v404_v13 = vmul.f32 %v769_v12, %v402_v7  ;;  %v408_v14 = vmul.f32 %v769_v12, %v406_v8  ;;  %v1201_v15 = vmul.f32 %v769_v12, %v1194_v9  ;;  %v1204_v16 = vmul.f32 %v769_v12, %v1196_v10  ;;  %v275_v17 = vpop.f32.mrb[1].mxu0 }
 0x144   : > { %v1207_v18 = vmul.f32 %v769_v12, %v1198_v11  ;;  %v403_v19 = vmul.f32 %v402_v7, %v275_v17  ;;  %v407_v20 = vmul.f32 %v406_v8, %v275_v17  ;;  %v1210_v21 = vmul.f32 %v1194_v9, %v275_v17  ;;  %v770_v22 = vpop.f32.mrb[2].mxu0 }
 0x145   : > { %v412_v23 = vrot.slane %v408_v14, 7  ;;  %v424_v24 = vrot.slane %v1201_v15, 6  ;;  %v436_v25 = vrot.slane %v1204_v16, 7  ;;  %v479_v26 = vrot.slane %v1204_v16, 1  ;;  %v278_v27 = vpop.f32.mrb[3].mxu0 }
 0x146   : > { %v491_v28 = vrot.slane %v1207_v18, 2  ;;  %v411_v29 = vrot.slane %v407_v20, 7  ;;  %v423_v30 = vrot.slane %v1210_v21, 6  ;;  %v1218_v31 = vmul.f32 %v1196_v10, %v275_v17 }
 0x147   : > { %v416_v32 = vadd.f32 %v412_v23, %v404_v13  ;;  %v1221_v33 = vmul.f32 %v1198_v11, %v275_v17  ;;  %v293_v34 = vmul.f32 %v402_v7, %v278_v27  ;;  %v295_v35 = vmul.f32 %v770_v22, %v402_v7 }
 0x148   : > { %v415_v36 = vadd.f32 %v411_v29, %v403_v19  ;;  %v435_v37 = vrot.slane %v1218_v31, 7  ;;  %v478_v38 = vrot.slane %v1218_v31, 1  ;;  %v299_v39 = vmul.f32 %v406_v8, %v278_v27 }
 0x149   : > { %v428_v40 = vadd.f32 %v424_v24, %v416_v32  ;;  %v471_v41 = vadd.f32 %v1201_v15, %v416_v32  ;;  %v490_v42 = vrot.slane %v1221_v33, 2  ;;  %v301_v43 = vmul.f32 %v770_v22, %v406_v8 }
 0x14a   : > { %v427_v44 = vadd.f32 %v423_v30, %v415_v36  ;;  %v470_v45 = vadd.f32 %v1210_v21, %v415_v36  ;;  %v307_v46 = vrot.slane %v407_v20, 1  ;;  %v308_v47 = vrot.slane %v299_v39, 1 }
 0x14b   : > { %v440_v48 = vadd.f32 %v436_v25, %v428_v40  ;;  %v483_v49 = vadd.f32 %v479_v26, %v471_v41  ;;  %v310_v50 = vrot.slane %v408_v14, 1  ;;  %v311_v51 = vrot.slane %v301_v43, 1 }
 0x14c   : > { %v439_v52 = vadd.f32 %v435_v37, %v427_v44  ;;  %v482_v53 = vadd.f32 %v478_v38, %v470_v45  ;;  %v309_v54 = vsel %vm306_vm1, %v307_v46, %v308_v47  ;;  %v318_v55 = vadd.f32 %v308_v47, %v293_v34 }
 0x14d   : > { %v446_v56 = vadd.f32 %v1207_v18, %v440_v48  ;;  %v495_v57 = vadd.f32 %v491_v28, %v483_v49  ;;  %v312_v58 = vsel %vm306_vm1, %v310_v50, %v311_v51  ;;  %v317_v59 = vadd.f32 %v403_v19, %v309_v54 }
 0x14e   : > { %v445_v60 = vadd.f32 %v1221_v33, %v439_v52  ;;  %v494_v61 = vadd.f32 %v490_v42, %v482_v53  ;;  %v319_v62 = vadd.f32 %v404_v13, %v312_v58  ;;  %v320_v63 = vadd.f32 %v311_v51, %v295_v35 }
 0x14f   : > { %449 = vst.msk [vmem:[%s1234_s10 + $0xe] sm:$0x4] %vm447_vm2, %v446_v56  ;;  %v324_v0 = vmul.f32 %v1194_v9, %v278_v27  ;;  %v326_v1 = vmul.f32 %v770_v22, %v1194_v9  ;;  %v332_v2 = vrot.slane %v1210_v21, 2  ;;  %v335_v3 = vrot.slane %v1201_v15, 2 }
 0x150   : > { %498 = vst.msk [vmem:[%s1234_s10 + $0x10] sm:$0x2] %vm496_vm3, %v495_v57  ;;  %497 = vst.msk [vmem:[%s1234_s10] sm:$0x2] %vm496_vm3, %v494_v61  ;;  %v349_v4 = vmul.f32 %v1196_v10, %v278_v27  ;;  %v351_v5 = vmul.f32 %v770_v22, %v1196_v10  ;;  %v357_v6 = vrot.slane %v1218_v31, 3  ;;  %v360_v7 = vrot.slane %v1204_v16, 3 }
 0x151   : > { %448 = vst.msk [vmem:[%s1234_s10 - $0x2] sm:$0x4] %vm447_vm2, %v445_v60  ;;  %v333_v8 = vrot.slane %v324_v0, 2  ;;  %v336_v12 = vrot.slane %v326_v1, 2  ;;  %v374_v9 = vmul.f32 %v1198_v11, %v278_v27  ;;  %v376_v13 = vmul.f32 %v770_v22, %v1198_v11 }
 0x152   : > { %v358_v14 = vrot.slane %v349_v4, 3  ;;  %v361_v15 = vrot.slane %v351_v5, 3  ;;  %v382_v17 = vrot.slane %v1221_v33, 4  ;;  %v385_v19 = vrot.slane %v1207_v18, 4 }
 0x153   : > { %v334_v20 = vsel %vm331_vm4, %v332_v2, %v333_v8  ;;  %v337_v10 = vsel %vm331_vm4, %v335_v3, %v336_v12  ;;  %v343_v21 = vadd.f32 %v333_v8, %v318_v55  ;;  %v345_v23 = vadd.f32 %v336_v12, %v320_v63 }
 0x154   : > { %v342_v24 = vadd.f32 %v334_v20, %v317_v59  ;;  %v344_v16 = vadd.f32 %v337_v10, %v319_v62  ;;  %v359_v25 = vsel %vm356_vm5, %v357_v6, %v358_v14  ;;  %v362_v11 = vsel %vm356_vm5, %v360_v7, %v361_v15 }
 0x155   : > { %v368_v22 = vadd.f32 %v358_v14, %v343_v21  ;;  %v370_v26 = vadd.f32 %v361_v15, %v345_v23  ;;  %v383_v27 = vrot.slane %v374_v9, 4  ;;  %v386_v18 = vrot.slane %v376_v13, 4 }
 0x156   : > { %v367_v28 = vadd.f32 %v359_v25, %v342_v24  ;;  %v369_v29 = vadd.f32 %v362_v11, %v344_v16  ;;  %v545_v36 = vrot.slane %v374_v9, 2  ;;  %v546_v37 = vrot.slane %v376_v13, 2 }
 0x157   : > { %v384_v30 = vsel %vm381_vm6, %v382_v17, %v383_v27  ;;  %v387_v31 = vsel %vm381_vm6, %v385_v19, %v386_v18  ;;  %v393_v32 = vadd.f32 %v383_v27, %v368_v22  ;;  %v395_v33 = vadd.f32 %v386_v18, %v370_v26 }
 0x158   : > { %v392_v34 = vadd.f32 %v384_v30, %v367_v28  ;;  %v394_v35 = vadd.f32 %v387_v31, %v369_v29  ;;  %v549_v38 = vadd.f32 %v545_v36, %v368_v22  ;;  %v550_v39 = vadd.f32 %v546_v37, %v370_v26 }
 0x159   : > { %398 = vst.msk [vmem:[%s1234_s10 + $0xa] sm:$0xf] %vm397_vm7, %v393_v32  ;;  %400 = vst.msk [vmem:[%s1234_s10 + $0x1a] sm:$0xf] %vm397_vm7, %v395_v33  ;;  %v588_v40 = vrot.slane %v349_v4, 1  ;;  %v589_v41 = vrot.slane %v351_v5, 1 }
 0x15a   : > { %396 = vst.msk [vmem:[%s1234_s10 + $0x2] sm:$0xff] %vm234_vm0, %v392_v34  ;;  %399 = vst.msk [vmem:[%s1234_s10 + $0x12] sm:$0xff] %vm234_vm0, %v394_v35 }
 0x15b   : > { %552 = vst.msk [vmem:[%s1234_s10 + $0xa] sm:$0x10] %vm551_vm8, %v549_v38  ;;  %553 = vst.msk [vmem:[%s1234_s10 + $0x1a] sm:$0x10] %vm551_vm8, %v550_v39  ;;  %v592_v42 = vadd.f32 %v588_v40, %v343_v21  ;;  %v593_v43 = vadd.f32 %v589_v41, %v345_v23 }
 0x15d   : > { %v598_v44 = vadd.f32 %v592_v42, %v374_v9  ;;  %v599_v45 = vadd.f32 %v593_v43, %v376_v13 }
 0x15f   : > { %601 = vst.msk [vmem:[%s1234_s10 + $0xa] sm:$0x20] %vm600_vm9, %v598_v44  ;;  %602 = vst.msk [vmem:[%s1234_s10 + $0x1a] sm:$0x20] %vm600_vm9, %v599_v45 }
 0x160   : > { %929 = shalt.err (!%p926_p7)
}
 0x161   : > { %s930_s27 = scalar_lea.hbm %s1275_s28, 512  ;;  %s934_s26 = scalar_lea.hbm %s1325_s3, 2048 }
 0x162   : > { %p931_p11 = scmp.ne.s32.totalorder %s1275_s28, %s930_s27  ;;  %p935_p2 = scmp.lt.u32.totalorder %s1275_s28, %s1325_s3 }
 0x163   : > { %p936_p3 = scmp.lt.u32.totalorder %s934_s26, %s930_s27  ;;  %p938_p8 = scmp.lt.u32.totalorder %s930_s27, %s1275_s28 }
 0x164   : > { %p932_p13 = pnand %p931_p11, %p1344_p9 }
 0x165   : > { %p937_p6 = por %p936_p3, %p935_p2 }
 0x166   : > { %p933_p1 = pneg %p932_p13 }
 0x167   : > { %p939_p5 = por %p938_p8, %p937_p6 }
 0x169   : > { %p940_p10 = pnand %p939_p5, %p933_p1 }
 0x16b   : > { %943 = shalt.err (!%p940_p10)
}
 0x16c   : > { %s1000_s9 = smov 128   ;;  %s1001_s10 = smov 8  }
 0x16d   : > { %781 = dma.vmem_to_hbm [thread:$0]  (%p1344_p9), %s1277_s17, 512, %s1275_s28, %s604_s16, %s1000_s9, %s1000_s9, %s1001_s10  }
 0x16e PF: > { %p803_p4 = scmp.ge.s32.totalorder %s990_s15, 2  ;;  %s633_s11 = sand.u32 1, %s978_s12  }
 0x16f   : > { %p1345_p12 = scmp.ne.s32.totalorder %s1333_s24, 0  ;;  %s634_s19 = scalar_lea.sflag [#allocation4], %s633_s11 }
 0x171   : > { %p795_p0 = pnand %p803_p4, %p1345_p12 }
 0x173   : > { %973 = dma.done.wait (!%p795_p0), %s634_s19, 512  }
 0x174   : > { %975 = vsyncadd (!%p795_p0), %s634_s19, 4294966784  ;;  %p18_p7 = scmp.ge.s32.totalorder %s1047_s18, 6   ;;  %s1346_s12 = smov %s982_s13 }
 0x175   : > { %s1347_s13 = smov %s986_s14  ;;  %s1348_s14 = smov %s1059_s21 }
 0x176   : > { %s1349_s15 = smov %s1047_s18  ;;  %20 = sbr.rel (!%p18_p7) target bundleno = 7 (0x7), region = 87 }
 0x17d   :  { %639 = vsyncpa [#allocation3], 1 }
 0x17e   :  { %641 = vsyncpa [#allocation3 + $0x1], 1 }
 0x17f   :  { %642 = vsyncpa [#allocation8], 1 }
 0x180   :  { %644 = vsyncpa [#allocation8 + $0x1], 1 }
 0x181   :  { %645 = vsyncpa [#allocation4], 1 }
 0x182   :  { %647 = vsyncpa [#allocation4 + $0x1], 1 }
 0x183   :  { %648 = vsyncpa [#allocation5], 1 }
 0x184   :  { %650 = vsyncpa [#allocation5 + $0x1], 1 }

</bundles_post_ra>
